<compile_context>
chip_gen: v5e
topology: v5e:2x2
jax: 0.10.0
libtpu: 0.0.40
codegen_flags: <defaults>
</compile_context>

<pallas_src>
import math

import jax
import jax.numpy as jnp
from jax import lax
from jax.experimental import pallas as pl
from jax.experimental.pallas import tpu as pltpu


def _round_up(x, m):
    return (x + m - 1) // m * m


def _make_kernel(num_heads, ek, dim, lq_tile, matmul_dtype, approx_recip):
    def kernel(q_ref, k_ref, rhs_ref, vmean_ref, hk_ref, o_ref):
        # q_ref   : (1, lq_tile, E)   pre-scaled projected queries (matmul_dtype)
        # k_ref   : (1, Lk, E)        projected keys               (matmul_dtype)
        # rhs_ref : (1, Lk, 2*D)      [mask*value | mask]          (matmul_dtype)
        # vmean_ref: (1, 1, D)        mean of value over keys      (f32)
        # hk_ref  : (1, 1, D)         1.0 if any key unmasked      (f32)
        # o_ref   : (1, lq_tile, H*D) output, heads on lanes       (f32)
        q = q_ref[0]                       # (lq, E)
        k = k_ref[0]                       # (Lk, E)
        rhs = rhs_ref[0]                   # (Lk, 2D)
        v_mean = vmean_ref[0]              # (1, D)  f32
        has_key = hk_ref[0] > 0.0          # (1, D)  bool

        # Per-head QK^T (tiny contraction dim), row-max-normalized exp; stack
        # along sublanes so one MXU matmul handles the key reduction for all
        # heads against the shared (Lk, 2D) RHS.
        es = []
        for h in range(num_heads):
            q_h = q[:, h * ek:(h + 1) * ek]        # static lane slice
            k_h = k[:, h * ek:(h + 1) * ek]
            s = lax.dot_general(q_h, k_h, (((1,), (1,)), ((), ())),
                                preferred_element_type=jnp.float32)  # (lq, Lk)
            e = jnp.exp(s - jnp.max(s, axis=-1, keepdims=True))
            es.append(e.astype(matmul_dtype))
        e_all = jnp.concatenate(es, axis=0)                           # (H*lq, Lk)

        nd = jnp.dot(e_all, rhs, preferred_element_type=jnp.float32)  # (H*lq, 2D)
        num = nd[:, :dim]
        den = jnp.maximum(nd[:, dim:], jnp.float32(1e-30))
        out_all = num * pl.reciprocal(den, approx=approx_recip)       # (H*lq, D)
        # Reference semantics: a (q, d) column whose keys are ALL masked gets a
        # uniform softmax over -1e9 scores, i.e. the plain mean of values.
        out_all = jnp.where(has_key, out_all, v_mean)

        # Direct per-head lane-slice stores (no concatenate / repack).
        for h in range(num_heads):
            o_ref[0, :, h * dim:(h + 1) * dim] = (
                out_all[h * lq_tile:(h + 1) * lq_tile, :].astype(o_ref.dtype))

    return kernel


def multi_time_attention(query, key, value, mask, Wq, bq, Wk, bk, num_heads,
                         *, matmul_dtype=jnp.bfloat16, lq_tile=None,
                         approx_recip=True, vmem_limit_bytes=None):
    """Pallas implementation of multiTimeAttention.forward
    (mask path; dropout=None, causal_mask=None)."""
    B, Lk, D = value.shape
    Lq = query.shape[1]
    E = Wq.shape[0]
    assert E % num_heads == 0
    ek = E // num_heads
    scale = 1.0 / math.sqrt(ek)

    # --- batch-invariant precompute (plain JAX glue, done once) -------------
    # Fold 1/sqrt(d_k) into the query projection so the kernel never scales
    # the (lq, Lk) score matrices.
    qp = (query @ (Wq.T * scale) + bq * scale).astype(matmul_dtype)   # (B, Lq, E)
    kp = (key @ Wk.T + bk).astype(matmul_dtype)                       # (B, Lk, E)

    vf = value.astype(jnp.float32)
    mf = mask.astype(jnp.float32)
    rhs = jnp.concatenate([mf * vf, mf], axis=-1).astype(matmul_dtype)  # (B, Lk, 2D)
    v_mean = jnp.mean(vf, axis=1, keepdims=True)                        # (B, 1, D)
    has_key = (jnp.sum(mf, axis=1, keepdims=True) > 0.0).astype(jnp.float32)

    # --- Lq tiling (pad instead of silently falling back to full Lq) --------
    if lq_tile is None:
        lq_tile = min(256, _round_up(Lq, 8))      # 256 keeps blocks VMEM-safe on v7x
    lq_tile = _round_up(lq_tile, 8)
    Lq_pad = _round_up(Lq, lq_tile)
    if Lq_pad != Lq:
        qp = jnp.pad(qp, ((0, 0), (0, Lq_pad - Lq), (0, 0)))
    n_lq = Lq_pad // lq_tile

    kernel = _make_kernel(num_heads, ek, D, lq_tile, matmul_dtype, approx_recip)

    cp_kwargs = dict(dimension_semantics=("parallel", "arbitrary"))
    if vmem_limit_bytes is not None:
        cp_kwargs["vmem_limit_bytes"] = vmem_limit_bytes

    out = pl.pallas_call(
        kernel,
        out_shape=jax.ShapeDtypeStruct((B, Lq_pad, num_heads * D), jnp.float32),
        grid=(B, n_lq),
        in_specs=[
            pl.BlockSpec((1, lq_tile, E), lambda b, t: (b, t, 0)),
            pl.BlockSpec((1, Lk, E), lambda b, t: (b, 0, 0)),
            pl.BlockSpec((1, Lk, 2 * D), lambda b, t: (b, 0, 0)),
            pl.BlockSpec((1, 1, D), lambda b, t: (b, 0, 0)),
            pl.BlockSpec((1, 1, D), lambda b, t: (b, 0, 0)),
        ],
        out_specs=pl.BlockSpec((1, lq_tile, num_heads * D),
                               lambda b, t: (b, t, 0)),
        compiler_params=pltpu.CompilerParams(**cp_kwargs),
    )(qp, kp, rhs, v_mean, has_key)

    if Lq_pad != Lq:
        out = out[:, :Lq, :]
    return out                                    # already (B, Lq, H*D)


def _reference(query, key, value, mask, Wq, bq, Wk, bk, num_heads):
    """Pure-JAX reference mirroring the PyTorch module (for verification)."""
    B, Lk, D = value.shape
    Lq = query.shape[1]
    E = Wq.shape[0]
    ek = E // num_heads
    q = (query @ Wq.T + bq).reshape(B, Lq, num_heads, ek).transpose(0, 2, 1, 3)
    k = (key @ Wk.T + bk).reshape(B, Lk, num_heads, ek).transpose(0, 2, 1, 3)
    scores = jnp.einsum("bhqe,bhke->bhqk", q, k) / math.sqrt(ek)
    s = scores[..., None]                                    # (B,H,Lq,Lk,1)
    m = mask.astype(jnp.float32)[:, None, None, :, :]        # (B,1,1,Lk,D)
    s = jnp.where(m == 0.0, -1e9, s)                         # (B,H,Lq,Lk,D)
    p = jax.nn.softmax(s, axis=-2)
    out = jnp.sum(p * value[:, None, None, :, :], axis=-2)   # (B,H,Lq,D)
    return out.transpose(0, 2, 1, 3).reshape(B, Lq, num_heads * D)


if __name__ == "__main__":
    # Small shapes consistent with the module's forward:
    #   query: (B, Lq, embed_time), key: (B, Lk, embed_time)
    #   value/mask: (B, Lk, input_dim)
    B, Lq, Lk = 2, 12, 10          # Lq=12 exercises the Lq-padding path
    embed_time = 16
    num_heads = 2
    input_dim = 4

    key0 = jax.random.PRNGKey(0)
    ks = jax.random.split(key0, 8)

    query = jax.random.normal(ks[0], (B, Lq, embed_time), dtype=jnp.float32)
    key_t = jax.random.normal(ks[1], (B, Lk, embed_time), dtype=jnp.float32)
    value = jax.random.normal(ks[2], (B, Lk, input_dim), dtype=jnp.float32)
    mask = jax.random.bernoulli(ks[3], 0.7, (B, Lk, input_dim)).astype(jnp.float32)
    # Exercise the all-keys-masked fallback path for one (batch, dim) column.
    mask = mask.at[0, :, 0].set(0.0)

    # Deterministic parameter init (nn.Linear(embed_time, embed_time) x2).
    bound = 1.0 / math.sqrt(embed_time)
    Wq = jax.random.uniform(ks[4], (embed_time, embed_time), jnp.float32, -bound, bound)
    bq = jax.random.uniform(ks[5], (embed_time,), jnp.float32, -bound, bound)
    Wk = jax.random.uniform(ks[6], (embed_time, embed_time), jnp.float32, -bound, bound)
    bk = jax.random.uniform(ks[7], (embed_time,), jnp.float32, -bound, bound)

    ref = _reference(query, key_t, value, mask, Wq, bq, Wk, bk, num_heads)

    # Default (perf) path: bf16 MXU operands, f32 accumulation.
    out_bf16 = multi_time_attention(query, key_t, value, mask, Wq, bq, Wk, bk,
                                    num_heads)
    out_bf16 = jax.block_until_ready(out_bf16)
    assert out_bf16.shape == (B, Lq, num_heads * input_dim), out_bf16.shape
    err_bf16 = float(jnp.max(jnp.abs(out_bf16 - ref)))
    assert jnp.allclose(out_bf16, ref, atol=5e-2, rtol=5e-2), err_bf16

    # Strict-parity path: f32 operands (same kernel code path).
    out_f32 = multi_time_attention(query, key_t, value, mask, Wq, bq, Wk, bk,
                                   num_heads, matmul_dtype=jnp.float32)
    out_f32 = jax.block_until_ready(out_f32)
    err_f32 = float(jnp.max(jnp.abs(out_f32 - ref)))
    assert jnp.allclose(out_f32, ref, atol=2e-3, rtol=2e-3), err_f32

    print("KERNEL_OK")
</pallas_src>

<mosaic_0001>
module attributes {stable_mosaic.version = 11 : i64} {
  func.func @kernel(%arg0: i32, %arg1: i32, %arg2: memref<1x16x16xbf16, #tpu.memory_space<vmem>>, %arg3: memref<1x10x16xbf16, #tpu.memory_space<vmem>>, %arg4: memref<1x10x8xbf16, #tpu.memory_space<vmem>>, %arg5: memref<1x1x4xf32, #tpu.memory_space<vmem>>, %arg6: memref<1x1x4xf32, #tpu.memory_space<vmem>>, %arg7: memref<1x16x8xf32, #tpu.memory_space<vmem>>) attributes {dimension_semantics = [#tpu.dimension_semantics<parallel>, #tpu.dimension_semantics<arbitrary>], iteration_bounds = array<i64: 2, 1>, scalar_prefetch = 0 : i64, scratch_operands = 0 : i64, tpu.core_type = #tpu.core_type<tc>, window_params = [{transform_indices = @transform_0, window_bounds = array<i64: 1, 16, 16>}, {transform_indices = @transform_1, window_bounds = array<i64: 1, 10, 16>}, {transform_indices = @transform_2, window_bounds = array<i64: 1, 10, 8>}, {transform_indices = @transform_3, window_bounds = array<i64: 1, 1, 4>}, {transform_indices = @transform_4, window_bounds = array<i64: 1, 1, 4>}, {transform_indices = @transform_5, window_bounds = array<i64: 1, 16, 8>}]} {
    %c0 = arith.constant 0 : index
    %c0_0 = arith.constant 0 : index
    %c0_1 = arith.constant 0 : index
    %0 = vector.load %arg2[%c0, %c0_0, %c0_1] : memref<1x16x16xbf16, #tpu.memory_space<vmem>>, vector<1x16x16xbf16>
    %1 = vector.shape_cast %0 : vector<1x16x16xbf16> to vector<16x16xbf16>
    %c0_2 = arith.constant 0 : index
    %c0_3 = arith.constant 0 : index
    %c0_4 = arith.constant 0 : index
    %2 = vector.load %arg3[%c0_2, %c0_3, %c0_4] : memref<1x10x16xbf16, #tpu.memory_space<vmem>>, vector<1x10x16xbf16>
    %3 = vector.shape_cast %2 : vector<1x10x16xbf16> to vector<10x16xbf16>
    %c0_5 = arith.constant 0 : index
    %c0_6 = arith.constant 0 : index
    %c0_7 = arith.constant 0 : index
    %4 = vector.load %arg4[%c0_5, %c0_6, %c0_7] : memref<1x10x8xbf16, #tpu.memory_space<vmem>>, vector<1x10x8xbf16>
    %5 = vector.shape_cast %4 : vector<1x10x8xbf16> to vector<10x8xbf16>
    %c0_8 = arith.constant 0 : index
    %c0_9 = arith.constant 0 : index
    %c0_10 = arith.constant 0 : index
    %6 = vector.load %arg5[%c0_8, %c0_9, %c0_10] : memref<1x1x4xf32, #tpu.memory_space<vmem>>, vector<1x1x4xf32>
    %7 = vector.shape_cast %6 : vector<1x1x4xf32> to vector<1x4xf32>
    %c0_11 = arith.constant 0 : index
    %c0_12 = arith.constant 0 : index
    %c0_13 = arith.constant 0 : index
    %8 = vector.load %arg6[%c0_11, %c0_12, %c0_13] : memref<1x1x4xf32, #tpu.memory_space<vmem>>, vector<1x1x4xf32>
    %9 = vector.shape_cast %8 : vector<1x1x4xf32> to vector<1x4xf32>
    %cst = arith.constant 0.000000e+00 : f32
    %10 = vector.broadcast %cst : f32 to vector<1x4xf32>
    %11 = arith.cmpf ogt, %9, %10 : vector<1x4xf32>
    %12 = vector.extract_strided_slice %1 {offsets = [0, 0], sizes = [16, 8], strides = [1, 1]} : vector<16x16xbf16> to vector<16x8xbf16>
    %13 = vector.extract_strided_slice %3 {offsets = [0, 0], sizes = [10, 8], strides = [1, 1]} : vector<10x16xbf16> to vector<10x8xbf16>
    %cst_14 = arith.constant dense<0.000000e+00> : vector<16x10xf32>
    %14 = tpu.matmul %12, %13, %cst_14 {dimension_numbers = #tpu.dot_dimension_numbers<[1], [1], [0], [0], [0, 0, 1, 0], [], []>} : vector<16x8xbf16>, vector<10x8xbf16>, vector<16x10xf32> -> vector<16x10xf32>
    %cst_15 = arith.constant dense<0xFF800000> : vector<16xf32>
    %15 = vector.multi_reduction <maximumf>, %14, %cst_15 [1] : vector<16x10xf32> to vector<16xf32>
    %16 = vector.shape_cast %15 : vector<16xf32> to vector<16x1xf32>
    %17 = vector.broadcast %16 : vector<16x1xf32> to vector<16x10xf32>
    %18 = arith.subf %14, %17 : vector<16x10xf32>
    %19 = math.exp %18 : vector<16x10xf32>
    %20 = arith.truncf %19 : vector<16x10xf32> to vector<16x10xbf16>
    %21 = vector.extract_strided_slice %1 {offsets = [0, 8], sizes = [16, 8], strides = [1, 1]} : vector<16x16xbf16> to vector<16x8xbf16>
    %22 = vector.extract_strided_slice %3 {offsets = [0, 8], sizes = [10, 8], strides = [1, 1]} : vector<10x16xbf16> to vector<10x8xbf16>
    %cst_16 = arith.constant dense<0.000000e+00> : vector<16x10xf32>
    %23 = tpu.matmul %21, %22, %cst_16 {dimension_numbers = #tpu.dot_dimension_numbers<[1], [1], [0], [0], [0, 0, 1, 0], [], []>} : vector<16x8xbf16>, vector<10x8xbf16>, vector<16x10xf32> -> vector<16x10xf32>
    %cst_17 = arith.constant dense<0xFF800000> : vector<16xf32>
    %24 = vector.multi_reduction <maximumf>, %23, %cst_17 [1] : vector<16x10xf32> to vector<16xf32>
    %25 = vector.shape_cast %24 : vector<16xf32> to vector<16x1xf32>
    %26 = vector.broadcast %25 : vector<16x1xf32> to vector<16x10xf32>
    %27 = arith.subf %23, %26 : vector<16x10xf32>
    %28 = math.exp %27 : vector<16x10xf32>
    %29 = arith.truncf %28 : vector<16x10xf32> to vector<16x10xbf16>
    %30 = tpu.concatenate %20, %29 in 0 : vector<16x10xbf16>, vector<16x10xbf16> -> vector<32x10xbf16>
    %cst_18 = arith.constant dense<0.000000e+00> : vector<32x8xf32>
    %31 = tpu.matmul %30, %5, %cst_18 {dimension_numbers = #tpu.dot_dimension_numbers<[1], [0], [0], [1], [0, 0, 1, 1], [], []>} : vector<32x10xbf16>, vector<10x8xbf16>, vector<32x8xf32> -> vector<32x8xf32>
    %32 = vector.extract_strided_slice %31 {offsets = [0, 0], sizes = [32, 4], strides = [1, 1]} : vector<32x8xf32> to vector<32x4xf32>
    %33 = vector.extract_strided_slice %31 {offsets = [0, 4], sizes = [32, 4], strides = [1, 1]} : vector<32x8xf32> to vector<32x4xf32>
    %cst_19 = arith.constant 1.000000e-30 : f32
    %34 = vector.broadcast %cst_19 : f32 to vector<32x4xf32>
    %35 = arith.maximumf %33, %34 : vector<32x4xf32>
    %36 = tpu.reciprocal %35 {approx = true} : vector<32x4xf32> -> vector<32x4xf32>
    %37 = arith.mulf %32, %36 : vector<32x4xf32>
    %38 = vector.shape_cast %11 : vector<1x4xi1> to vector<1x4xi1>
    %39 = vector.broadcast %38 : vector<1x4xi1> to vector<32x4xi1>
    %40 = vector.shape_cast %7 : vector<1x4xf32> to vector<1x4xf32>
    %41 = vector.broadcast %40 : vector<1x4xf32> to vector<32x4xf32>
    %42 = arith.select %39, %37, %41 : vector<32x4xi1>, vector<32x4xf32>
    %43 = vector.extract_strided_slice %42 {offsets = [0, 0], sizes = [16, 4], strides = [1, 1]} : vector<32x4xf32> to vector<16x4xf32>
    %c0_20 = arith.constant 0 : index
    %c0_21 = arith.constant 0 : index
    %c0_22 = arith.constant 0 : index
    %44 = vector.load %arg7[%c0_20, %c0_21, %c0_22] : memref<1x16x8xf32, #tpu.memory_space<vmem>>, vector<1x16x4xf32>
    %45 = vector.shape_cast %44 : vector<1x16x4xf32> to vector<16x4xf32>
    %46 = vector.shape_cast %43 : vector<16x4xf32> to vector<1x16x4xf32>
    tpu.vector_store %arg7[%c0_20, %c0_21, %c0_22], %46 {strides = array<i32>} : memref<1x16x8xf32, #tpu.memory_space<vmem>>, vector<1x16x4xf32>,
    %47 = vector.extract_strided_slice %42 {offsets = [16, 0], sizes = [16, 4], strides = [1, 1]} : vector<32x4xf32> to vector<16x4xf32>
    %c0_23 = arith.constant 0 : index
    %c0_24 = arith.constant 0 : index
    %c4 = arith.constant 4 : index
    %48 = vector.load %arg7[%c0_23, %c0_24, %c4] : memref<1x16x8xf32, #tpu.memory_space<vmem>>, vector<1x16x4xf32>
    %49 = vector.shape_cast %48 : vector<1x16x4xf32> to vector<16x4xf32>
    %50 = vector.shape_cast %47 : vector<16x4xf32> to vector<1x16x4xf32>
    tpu.vector_store %arg7[%c0_23, %c0_24, %c4], %50 {strides = array<i32>} : memref<1x16x8xf32, #tpu.memory_space<vmem>>, vector<1x16x4xf32>,
    return
  }
  func.func @transform_0(%arg0: i32, %arg1: i32) -> (i32, i32, i32) {
    %c0_i32 = arith.constant 0 : i32
    %c0_i32_0 = arith.constant 0 : i32
    return %arg0, %arg1, %c0_i32 : i32, i32, i32
  }
  func.func @transform_1(%arg0: i32, %arg1: i32) -> (i32, i32, i32) {
    %c0_i32 = arith.constant 0 : i32
    %c0_i32_0 = arith.constant 0 : i32
    %c0_i32_1 = arith.constant 0 : i32
    return %arg0, %c0_i32, %c0_i32_0 : i32, i32, i32
  }
  func.func @transform_2(%arg0: i32, %arg1: i32) -> (i32, i32, i32) {
    %c0_i32 = arith.constant 0 : i32
    %c0_i32_0 = arith.constant 0 : i32
    %c0_i32_1 = arith.constant 0 : i32
    return %arg0, %c0_i32, %c0_i32_0 : i32, i32, i32
  }
  func.func @transform_3(%arg0: i32, %arg1: i32) -> (i32, i32, i32) {
    %c0_i32 = arith.constant 0 : i32
    %c0_i32_0 = arith.constant 0 : i32
    %c0_i32_1 = arith.constant 0 : i32
    return %arg0, %c0_i32, %c0_i32_0 : i32, i32, i32
  }
  func.func @transform_4(%arg0: i32, %arg1: i32) -> (i32, i32, i32) {
    %c0_i32 = arith.constant 0 : i32
    %c0_i32_0 = arith.constant 0 : i32
    %c0_i32_1 = arith.constant 0 : i32
    return %arg0, %c0_i32, %c0_i32_0 : i32, i32, i32
  }
  func.func @transform_5(%arg0: i32, %arg1: i32) -> (i32, i32, i32) {
    %c0_i32 = arith.constant 0 : i32
    %c0_i32_0 = arith.constant 0 : i32
    return %arg0, %arg1, %c0_i32 : i32, i32, i32
  }
}

</mosaic_0001>

<bundles_post_ra>
// kernel: tpu_custom_call.1
= control target key start
LH: loop header
LB: loop body
LE: loop exit
PB: predicated region body
PF: predicated region fallthrough
CT: control target
= control target key end

     0   :  { %s793_s18 = smov 0   ;;  %s795_s19 = smov 0   ;;  %s879_s0 = inlined_call_operand.vmem [shape: bf16[2,16,16], index: 0, kind: input, shape index: {}]   ;;  %s880_s1 = inlined_call_operand.vmem [shape: bf16[2,10,16], index: 1, kind: input, shape index: {}]   ;;  %s881_s2 = inlined_call_operand.vmem [shape: bf16[2,10,8], index: 2, kind: input, shape index: {}]   ;;  %s882_s3 = inlined_call_operand.vmem [shape: f32[2,1,4], index: 3, kind: input, shape index: {}]   ;;  %s883_s4 = inlined_call_operand.vmem [shape: f32[2,1,4], index: 4, kind: input, shape index: {}]   ;;  %s884_s5 = inlined_call_operand.vmem [shape: f32[2,16,8], index: 5, kind: output, shape index: {}]  }
   0x1   :  { %s797_s20 = smov 0  }
   0x2 LB: > { %s27_s21 = sadd.s32 1, %s753_s19  ;;  %p655_p0 = scmp.ge.s32.totalorder %s757_s20, 1  ;;  %s757_s20 = sphi %s797_s20, %s15_s20   ;;  %s753_s19 = sphi %s795_s19, %s888_s19   ;;  %s749_s18 = sphi %s793_s18, %s887_s18  }
   0x3   : > { %p29_p1 = scmp.ge.s32.totalorder %s27_s21, 2  ;;  %p244_p2 = scmp.lt.s32.totalorder %s757_s20, 3 }
   0x5   : > { %s890_s21 = smov (%p29_p1, %s27_s21), 0  ;;  %p245_p3 = pnand %p655_p0, %p244_p2 }
   0x6   : > { %p297_p4 = scmp.lt.s32.totalorder (!%p245_p3), %s749_s18, 1  ;;  %s759_s26 = smov (!%p245_p3), 120  }
   0x7   : > { %248 = sbr.rel (%p245_p3) target bundleno = 792 (0x318), region = 40  ;;  %s760_s11 = smov (!%p245_p3), 124  }
   0xc   : > { %s892_s18 = smov (!%p297_p4, %s749_s18), 1  ;;  %vm352_vm0 = vcmask 64512   ;;  %vm373_vm1 = vcmask 80896   ;;  %vm447_vm2 = vcmask 1044480   ;;  %v761_v50 = vmov 0  }
   0xd   : > { %s682_s22 = sshll.u32 %s892_s18, 3  ;;  %s318_s10 = scalar_lea.vmem %s882_s3, %s892_s18  ;;  %vm508_vm5 = vcmask 31744   ;;  %vm519_vm6 = vcmask 64544  }
   0xe   : > { %s310_s25 = scalar_lea.vmem %s880_s1, %s682_s22  ;;  %s304_s29 = scalar_lea.vmem %s879_s0, %s682_s22  ;;  %v718_v53 = vld [vmem:[%s318_s10] ss:$0 sm:$0xff] }
   0xf   : > { %v670_v0 = vld [vmem:[%s310_s25] sm:$0xf]  ;;  %v687_v1 = vld [vmem:[%s310_s25] sm:$0x10]  ;;  %s315_s7 = scalar_lea.vmem %s881_s2, %s682_s22  ;;  %s321_s14 = scalar_lea.vmem %s883_s4, %s892_s18 }
  0x10   : > { %v671_v2 = vor.u32 %v687_v1, %v670_v0  ;;  %v686_v4 = vld [vmem:[%s304_s29] sm:$0xff]  ;;  %s685_s15 = sshll.u32 %s892_s18, 4  ;;  %s762_s18 = smov 4  }
  0x11   : > { %v676_v12 = vld [vmem:[%s315_s7] sm:$0xf]  ;;  %v688_v13 = vld [vmem:[%s315_s7] sm:$0x10]  ;;  %s851_s24 = scalar_lea.vmem %s884_s5, %s685_s15 }
  0x12   : > { %390 = vrot.lane.b32.xlu0 %v671_v2, %s759_s26  ;;  %v357_v3 = vsel %vm352_vm0, %v671_v2, 0  ;;  %v677_v14 = vor.u32 %v688_v13, %v676_v12  ;;  %v340_v49 = vld [vmem:[%s321_s14] sm:$0x1] }
  0x13   : > { %366 = vmatpush.bf16.xpose.msra.mxu0 %v357_v3  ;;  %vm341_vm3 = vcmp.gt.f32.partialorder %v340_v49, 0.0 }
  0x14   : > { %v449_v15 = vsel %vm447_vm2, %v677_v14, 0  ;;  %v498_v51 = vsel %vm341_vm3, 1, %v761_v50 }
  0x15   : > { %458 = vmatpush.bf16.msra.mxu2 %v449_v15  ;;  %689 = vmatpush.bf16.msra.mxu3 %v449_v15  ;;  %v499_v52 = vperm.slane %v498_v51, 0 }
  0x17   : > { %vm844_vm4 = vcmp.eq.s32.totalorder %v499_v52, 1 }
  0x1a   : > { %388 = vrot.lane.b32.xlu0 %v686_v4, %s759_s26  ;;  %672 = vmatmul.msk.bf16.vlgmr.msra.gmra.mxu0 %vm352_vm0, %v686_v4 }
  0x84   : > { %v391_v5 = vpop.permute.xlu0 %390 }
  0x85   : > { %v396_v6 = vsel %vm352_vm0, %v391_v5, 0 }
  0x86   : > { %405 = vmatpush.bf16.xpose.msra.mxu1 %v396_v6 }
  0x8c   : > { %v389_v7 = vpop.permute.xlu0 %388 }
  0x8d   : > { %673 = vmatmul.msk.bf16.vlgmr.msra.gmra.mxu1 %vm352_vm0, %v389_v7 }
  0x97   : > { %v368_v8 = vpop.f32.mrf.mxu0 }
  0x98   : > { %v374_v9 = vsel %vm373_vm1, %v368_v8, -inf }
  0x99   : > { %375 = vmax.xlane.f32.xlu2 %v374_v9 }
  0x9f   : > { %v370_v10 = vpop.f32.mrf.mxu0 }
  0xa0   : > { %v377_v11 = vsel %vm373_vm1, %v370_v10, -inf }
  0xa1   : > { %378 = vmax.xlane.f32.xlu2 %v377_v11 }
 0x10a   : > { %v407_v16 = vpop.f32.mrf.mxu1 }
 0x10b   : > { %v412_v17 = vsel %vm373_vm1, %v407_v16, -inf }
 0x10c   : > { %413 = vmax.xlane.f32.xlu1 %v412_v17  ;;  %v376_v18 = vpop.xlane.xlu2 %375 }
 0x10d   : > { %v380_v19 = vsub.f32 %v368_v8, %v376_v18 }
 0x10f   : > { %v382_v20 = vmul.f32 1.442695, %v380_v19 }
 0x111   : > { %719 = vpow2.f32 %v382_v20 }
 0x112   : > { %v409_v21 = vpop.f32.mrf.mxu1 }
 0x113   : > { %v415_v22 = vsel %vm373_vm1, %v409_v21, -inf }
 0x114   : > { %416 = vmax.xlane.f32.xlu1 %v415_v22  ;;  %v379_v23 = vpop.xlane.xlu2 %378 }
 0x115   : > { %v381_v24 = vsub.f32 %v370_v10, %v379_v23 }
 0x117   : > { %v384_v25 = vmul.f32 1.442695, %v381_v24  ;;  %v720_v26 = vpop.eup %719 }
 0x118   : > { %v386_v27 = vpack.c.bf16 %v720_v26, %v720_v26 }
 0x119   : > { %721 = vpow2.f32 %v384_v25 }
 0x11a   : > { %v428_v29 = vunpack.c.l.b16 %v386_v27 }
 0x11f   : > { %v722_v28 = vpop.eup %721 }
 0x120   : > { %v387_v30 = vpack.c.bf16 %v722_v28, %v722_v28 }
 0x122   : > { %v429_v31 = vunpack.c.l.b16 %v387_v30 }
 0x124   : > { %v430_v32 = vpack.c.b16 %v429_v31, %v428_v29 }
 0x126   : > { %678 = vmatmul.msk.bf16.vlgmr.msra.gmra.mxu2 %vm373_vm1, %v430_v32 }
 0x17f   : > { %v414_v33 = vpop.xlane.xlu1 %413 }
 0x180   : > { %v418_v34 = vsub.f32 %v407_v16, %v414_v33 }
 0x182   : > { %v420_v35 = vmul.f32 1.442695, %v418_v34 }
 0x184   : > { %723 = vpow2.f32 %v420_v35 }
 0x187   : > { %v417_v36 = vpop.xlane.xlu1 %416 }
 0x188   : > { %v419_v37 = vsub.f32 %v409_v21, %v417_v36 }
 0x18a   : > { %v422_v38 = vmul.f32 1.442695, %v419_v37  ;;  %v724_v39 = vpop.eup %723 }
 0x18b   : > { %v424_v40 = vpack.c.bf16 %v724_v39, %v724_v39 }
 0x18c   : > { %725 = vpow2.f32 %v422_v38 }
 0x18d   : > { %v433_v43 = vunpack.c.l.b16 %v424_v40 }
 0x192   : > { %v726_v41 = vpop.eup %725 }
 0x193   : > { %v425_v42 = vpack.c.bf16 %v726_v41, %v726_v41 }
 0x195   : > { %v434_v44 = vunpack.c.l.b16 %v425_v42 }
 0x197   : > { %v435_v45 = vpack.c.b16 %v434_v44, %v433_v43 }
 0x199   : > { %679 = vmatmul.msk.bf16.vlgmr.msra.gmra.mxu3 %vm373_vm1, %v435_v45 }
 0x1a9   : > { %v460_v46 = vpop.f32.mrf.mxu2 }
 0x1aa   : > { %v470_v47 = vmax.f32 %v460_v46, 1e-30 }
 0x1ac   : > { %727 = vrcp.f32 %v470_v47 }
 0x1b1   : > { %v462_v60 = vpop.f32.mrf.mxu2 }
 0x1b2   : > { %v728_v48 = vpop.eup %727  ;;  %v471_v61 = vmax.f32 %v462_v60, 1e-30 }
 0x1b3   : > { %482 = vrot.lane.b32.xlu2 %v728_v48, %s760_s11 }
 0x20d   : > { %v483_v55 = vpop.permute.xlu2 %482 }
 0x20e   : > { %v494_v56 = vmul.f32 %v483_v55, %v460_v46 }
 0x210   : > { %v504_v57 = vsel %vm844_vm4, %v494_v56, %v718_v53 }
 0x211   : > { %509 = vst.msk [vmem:[%s851_s24] sm:$0xff] %vm508_vm5, %v504_v57 }
 0x21c   : > { %v465_v58 = vpop.f32.mrf.mxu3 }
 0x21d   : > { %v472_v59 = vmax.f32 %v465_v58, 1e-30 }
 0x21f   : > { %729 = vrcp.f32 %v472_v59 }
 0x220   : > { %731 = vrcp.f32 %v471_v61 }
 0x224   : > { %v467_v62 = vpop.f32.mrf.mxu3 }
 0x225   : > { %v730_v63 = vpop.eup %729  ;;  %v473_v0 = vmax.f32 %v467_v62, 1e-30 }
 0x226   : > { %486 = vrot.lane.b32.xlu0 %v730_v63, %s760_s11  ;;  %v732_v1 = vpop.eup %731 }
 0x227   : > { %733 = vrcp.f32 %v473_v0 }
 0x22d   : > { %v734_v2 = vpop.eup %733 }
 0x22e   : > { %488 = vrot.lane.b32.xlu1 %v734_v2, %s760_s11  ;;  %484 = vrot.lane.b32.xlu0 %v732_v1, %s760_s11 }
 0x298   : > { %v487_v3 = vpop.permute.xlu0 %486 }
 0x299   : > { %v496_v4 = vmul.f32 %v487_v3, %v465_v58 }
 0x29b   : > { %v506_v5 = vsel %vm844_vm4, %v496_v4, %v718_v53 }
 0x29c   : > { %513 = vrot.lane.b32.xlu0 %v506_v5, %s762_s18 }
 0x2a0   : > { %v489_v6 = vpop.permute.xlu1 %488  ;;  %v485_v7 = vpop.permute.xlu0 %484 }
 0x2a1   : > { %v497_v8 = vmul.f32 %v489_v6, %v467_v62  ;;  %v495_v9 = vmul.f32 %v485_v7, %v462_v60 }
 0x2a3   : > { %v505_v10 = vsel %vm844_vm4, %v495_v9, %v718_v53  ;;  %v507_v11 = vsel %vm844_vm4, %v497_v8, %v718_v53 }
 0x2a4   : > { %510 = vst.msk [vmem:[%s851_s24 + $0x8] sm:$0xff] %vm508_vm5, %v505_v10  ;;  %515 = vrot.lane.b32.xlu0 %v507_v11, %s762_s18 }
 0x30e   : > { %v514_v12 = vpop.permute.xlu0 %513 }
 0x30f   : > { %520 = vst.msk [vmem:[%s851_s24] sm:$0xff] %vm519_vm6, %v514_v12 }
 0x316   : > { %v516_v13 = vpop.permute.xlu0 %515 }
 0x317   : > { %521 = vst.msk [vmem:[%s851_s24 + $0x8] sm:$0xff] %vm519_vm6, %v516_v13 }
 0x318 PF: > { %s15_s20 = sadd.s32 1, %s757_s20   ;;  %s887_s18 = smov %s753_s19 }
 0x319   : > { %p12_p5 = scmp.ge.s32.totalorder %s15_s20, 4   ;;  %s888_s19 = smov %s890_s21 }
 0x31b   :  { %14 = sbr.rel (!%p12_p5) target bundleno = 2 (0x2), region = 82 }

</bundles_post_ra>
